<compile_context>
chip_gen: v5e
topology: v5e:2x2
jax: 0.10.0
libtpu: 0.0.40
codegen_flags: <defaults>
</compile_context>

<pallas_src>
import functools

import jax
import jax.numpy as jnp
from jax.experimental import pallas as pl
from jax.experimental.pallas import tpu as pltpu

_LANE = 128
_ACC_W = 512                      # narrow accumulator width (lanes)
_MAX_UNROLL = 24                  # max 512-lane chunks folded per grid step
_SENTINEL = float(jnp.finfo(jnp.float32).min)


# --------------------------------------------------------------------------
# Kernel helpers (all VPU elementwise; the only XLU reduce is in finalize)
# --------------------------------------------------------------------------
def _masked_chunk(x_ref, m_ref, start, width, pool_type):
    """Load a lane-chunk of x / mask and apply the mask."""
    xs = x_ref[0, :, start:start + width].astype(jnp.float32)    # (tc, width)
    ms = m_ref[0, :, start:start + width]                        # (1, width) int8
    if pool_type == "max":
        return jnp.where(ms != 0, xs, _SENTINEL)
    return xs * ms.astype(jnp.float32)                           # mean: multiply, no select


def _combine(a, b, pool_type):
    return jnp.maximum(a, b) if pool_type == "max" else a + b


def _guarded_result(red, cnt, pool_type):
    has_any = cnt > 0
    if pool_type == "max":
        return jnp.where(has_any, red, 0.0)
    denom = jnp.maximum(cnt.astype(jnp.float32), 1.0)
    return jnp.where(has_any, red / denom, 0.0)


# --------------------------------------------------------------------------
# Multi-step kernel: grid = (B, C_tiles, HW_tiles), narrow acc scratch
# --------------------------------------------------------------------------
def _mask_pool_multi_kernel(cnt_ref, x_ref, m_ref, o_ref, acc_ref, *,
                            pool_type, acc_w, n_sub):
    b = pl.program_id(0)
    k = pl.program_id(2)

    @pl.when(k == 0)
    def _init():
        if pool_type == "max":
            acc_ref[...] = jnp.full_like(acc_ref, _SENTINEL)
        else:
            acc_ref[...] = jnp.zeros_like(acc_ref)

    # Fold the whole x tile into a (tc, acc_w) partial (unrolled, VPU-only),
    # then touch the VMEM accumulator exactly once per grid step.
    partial = _masked_chunk(x_ref, m_ref, 0, acc_w, pool_type)
    for s in range(1, n_sub):
        partial = _combine(
            partial, _masked_chunk(x_ref, m_ref, s * acc_w, acc_w, pool_type),
            pool_type)
    acc_ref[...] = _combine(acc_ref[...], partial, pool_type)

    @pl.when(k == pl.num_programs(2) - 1)
    def _fin():
        if pool_type == "max":
            red = jnp.max(acc_ref[...], axis=-1, keepdims=True)   # (tc, 1)
        else:
            red = jnp.sum(acc_ref[...], axis=-1, keepdims=True)
        res = _guarded_result(red, cnt_ref[b], pool_type)
        o_ref[...] = res[None].astype(o_ref.dtype)                # (1, tc, 1), no transpose


# --------------------------------------------------------------------------
# Single-step kernel: full HW in one block, no accumulator scratch at all
# --------------------------------------------------------------------------
def _mask_pool_single_kernel(cnt_ref, x_ref, m_ref, o_ref, *,
                             pool_type, acc_w, n_full, rem):
    b = pl.program_id(0)

    partial = _masked_chunk(x_ref, m_ref, 0, acc_w, pool_type)
    for s in range(1, n_full):
        partial = _combine(
            partial, _masked_chunk(x_ref, m_ref, s * acc_w, acc_w, pool_type),
            pool_type)
    if pool_type == "max":
        red = jnp.max(partial, axis=-1, keepdims=True)            # (tc, 1)
    else:
        red = jnp.sum(partial, axis=-1, keepdims=True)
    if rem > 0:                                                   # HW not a multiple of acc_w
        tail = _masked_chunk(x_ref, m_ref, n_full * acc_w, rem, pool_type)
        if pool_type == "max":
            red = jnp.maximum(red, jnp.max(tail, axis=-1, keepdims=True))
        else:
            red = red + jnp.sum(tail, axis=-1, keepdims=True)

    res = _guarded_result(red, cnt_ref[b], pool_type)
    o_ref[...] = res[None].astype(o_ref.dtype)                    # (1, tc, 1)


# --------------------------------------------------------------------------
# Wrapper
# --------------------------------------------------------------------------
def _nearest_resize_nchw(mask, H, W):
    # torch F.interpolate(mode='nearest'): src_idx = floor(dst_idx * in / out)
    h, w = mask.shape[2], mask.shape[3]
    rows = (jnp.arange(H) * h) // H
    cols = (jnp.arange(W) * w) // W
    return mask[:, :, rows, :][:, :, :, cols]


def _largest_mult8_divisor(C, limit):
    hi = min(limit, C)
    hi -= hi % 8
    for cand in range(hi, 7, -8):
        if C % cand == 0:
            return cand
    return None


def mask_pool(x, mask, pool_type="max", *, x_block_budget_bytes=None,
              max_unroll=_MAX_UNROLL):
    """Pallas implementation of MaskPool.forward. Returns (B, C) float32."""
    if pool_type not in ("max", "mean"):
        raise ValueError(f"Invalid pool_type: {pool_type}")
    x = jnp.asarray(x)
    if x.dtype not in (jnp.float32, jnp.bfloat16):
        x = x.astype(jnp.float32)          # bf16/f32 stream natively; others upcast
    B, C, H, W = x.shape

    mask = jnp.asarray(mask)
    if mask.ndim == 3:
        mask = mask[:, None]
    if mask.ndim != 4 or mask.shape[1] != 1:
        raise ValueError(f"Invalid mask shape: {mask.shape}")
    mask = mask != 0                       # binarize early (commutes with nearest resize)
    if mask.shape[2:] != (H, W):
        mask = _nearest_resize_nchw(mask, H, W)

    HW = H * W
    xf = x.reshape(B, C, HW)
    mf = mask.reshape(B, 1, HW)

    # Per-batch masked-pixel count -> SMEM via scalar prefetch.
    cnt = jnp.sum(mf.astype(jnp.int32), axis=(1, 2), dtype=jnp.int32)   # (B,)
    m8 = mf.astype(jnp.int8)               # 1-byte mask stream (4x less HBM than f32)

    # ---- channel tiling -------------------------------------------------
    tc = _largest_mult8_divisor(C, 256) or C
    num_c = C // tc
    if B * num_c < 2:                      # make sure both v7x TensorCores get work
        tc2 = _largest_mult8_divisor(C, C // 2)
        if tc2 is not None:
            tc, num_c = tc2, C // tc2

    # ---- HW tiling from the x double-buffer budget (per generation) -----
    if x_block_budget_bytes is None:
        try:
            vmem_cap = getattr(pltpu.get_tpu_info(), "vmem_capacity_bytes", None)
        except Exception:
            vmem_cap = None
        if vmem_cap is not None and vmem_cap >= 100 * 1024 * 1024:
            x_block_budget_bytes = 16 * 1024 * 1024   # v5e / v6e (128 MiB VMEM)
        else:
            x_block_budget_bytes = 10 * 1024 * 1024   # v7x (64 MiB VMEM) / unknown

    x_itemsize = jnp.dtype(x.dtype).itemsize
    lanes_budget = (x_block_budget_bytes // (tc * x_itemsize)) // _ACC_W * _ACC_W
    t_hw_max = max(_ACC_W, min(lanes_budget, max(1, max_unroll) * _ACC_W))

    if HW <= t_hw_max:
        # One full-HW block per (b, c-tile): no grid reduction loop, no padding,
        # no accumulator scratch.
        t_hw, num_k = HW, 1
        acc_w = min(_ACC_W, HW)
        n_full, rem = HW // acc_w, HW % acc_w
        kernel = functools.partial(_mask_pool_single_kernel, pool_type=pool_type,
                                   acc_w=acc_w, n_full=n_full, rem=rem)
        scratch = []
        acc_bytes = 0
    else:
        t_hw = t_hw_max
        hw_pad = pl.cdiv(HW, t_hw) * t_hw
        xf = jnp.pad(xf, ((0, 0), (0, 0), (0, hw_pad - HW)))
        m8 = jnp.pad(m8, ((0, 0), (0, 0), (0, hw_pad - HW)))
        num_k = hw_pad // t_hw
        n_sub = t_hw // _ACC_W
        kernel = functools.partial(_mask_pool_multi_kernel, pool_type=pool_type,
                                   acc_w=_ACC_W, n_sub=n_sub)
        scratch = [pltpu.VMEM((tc, _ACC_W), jnp.float32)]   # narrow accumulator
        acc_bytes = tc * _ACC_W * 4

    # ---- VMEM limit derived from the actual block footprint -------------
    x_block_bytes = tc * t_hw * x_itemsize
    m_block_bytes = 32 * t_hw                    # (1, t_hw) int8 block, padded tile rows
    out_bytes = max(tc, 8) * _LANE * 4           # conservative padded output block
    footprint = 2 * (x_block_bytes + m_block_bytes + out_bytes) + acc_bytes
    vmem_limit = int(min(max(footprint * 3 // 2 + (4 << 20), 32 << 20), 56 << 20))

    grid = (B, num_c, num_k)
    out = pl.pallas_call(
        kernel,
        out_shape=jax.ShapeDtypeStruct((B, C, 1), jnp.float32),
        grid_spec=pltpu.PrefetchScalarGridSpec(
            num_scalar_prefetch=1,
            grid=grid,
            in_specs=[
                pl.BlockSpec((1, tc, t_hw), lambda b, c, k, s: (b, c, k)),
                pl.BlockSpec((1, 1, t_hw), lambda b, c, k, s: (b, 0, k)),
            ],
            out_specs=pl.BlockSpec((1, tc, 1), lambda b, c, k, s: (b, c, 0)),
            scratch_shapes=scratch,
        ),
        compiler_params=pltpu.CompilerParams(
            dimension_semantics=("parallel", "parallel", "arbitrary"),
            vmem_limit_bytes=vmem_limit,
        ),
    )(cnt, xf, m8)
    return out[:, :, 0]


# --------------------------------------------------------------------------
# Pure-JAX reference matching the PyTorch semantics
# --------------------------------------------------------------------------
def mask_pool_ref(x, mask, pool_type="max"):
    x = jnp.asarray(x, jnp.float32)
    mask = jnp.asarray(mask, jnp.float32)
    if mask.ndim == 3:
        mask = mask[:, None]
    B, C, H, W = x.shape
    if mask.shape[2:] != (H, W):
        mask = _nearest_resize_nchw(mask, H, W)
    m = (mask != 0.0)[:, :1]                                     # (B,1,H,W)
    cnt = jnp.sum(m.astype(jnp.float32), axis=(2, 3))            # (B,1)
    if pool_type == "max":
        red = jnp.max(jnp.where(m, x, _SENTINEL), axis=(2, 3))   # (B,C)
    else:
        red = jnp.sum(jnp.where(m, x, 0.0), axis=(2, 3)) / jnp.maximum(cnt, 1.0)
    return jnp.where(cnt > 0.0, red, 0.0)


if __name__ == "__main__":
    key = jax.random.PRNGKey(0)
    kx, km, kx2, km2, kx3, km3 = jax.random.split(key, 6)

    # Case 1: small f32 map, single full-HW block; batch 1 has an empty mask
    # (exercises the zero-output path).
    B, C, H, W = 2, 4, 16, 16
    x = jax.random.normal(kx, (B, C, H, W), dtype=jnp.float32)
    m0 = (jax.random.uniform(km, (1, 1, H, W)) > 0.5).astype(jnp.float32)
    mask = jnp.concatenate([m0, jnp.zeros((1, 1, H, W), jnp.float32)], axis=0)
    for pool_type in ("max", "mean"):
        out = jax.block_until_ready(mask_pool(x, mask, pool_type))
        ref = mask_pool_ref(x, mask, pool_type)
        assert out.shape == (B, C), out.shape
        assert jnp.allclose(out, ref, atol=1e-5, rtol=1e-5), (pool_type, out, ref)

    # Case 2: bf16 feature map streamed natively (cast to f32 inside the kernel).
    xb = x.astype(jnp.bfloat16)
    for pool_type in ("max", "mean"):
        out = jax.block_until_ready(mask_pool(xb, mask, pool_type))
        ref = mask_pool_ref(xb, mask, pool_type)
        assert jnp.allclose(out, ref, atol=1e-4, rtol=1e-4), pool_type

    # Case 3: low-res mask (nearest resize) and HW not a multiple of 128.
    B2, C2, H2, W2 = 2, 8, 16, 10
    x2 = jax.random.normal(kx2, (B2, C2, H2, W2), dtype=jnp.float32)
    mask2 = (jax.random.uniform(km2, (B2, 1, 8, 5)) > 0.3).astype(jnp.float32)
    for pool_type in ("max", "mean"):
        out = jax.block_until_ready(mask_pool(x2, mask2, pool_type))
        ref = mask_pool_ref(x2, mask2, pool_type)
        assert out.shape == (B2, C2), out.shape
        assert jnp.allclose(out, ref, atol=1e-5, rtol=1e-5), pool_type

    # Case 4: HW > 512 — default path exercises the in-register chunk fold with a
    # remainder chunk; the forced tiny block budget exercises the tiled multi-step
    # accumulator path with zero-padding.
    B3, C3, H3, W3 = 2, 8, 16, 40
    x3 = jax.random.normal(kx3, (B3, C3, H3, W3), dtype=jnp.float32)
    mask3 = (jax.random.uniform(km3, (B3, 1, 8, 20)) > 0.4).astype(jnp.float32)
    for pool_type in ("max", "mean"):
        ref = mask_pool_ref(x3, mask3, pool_type)
        out = jax.block_until_ready(mask_pool(x3, mask3, pool_type))
        assert jnp.allclose(out, ref, atol=1e-5, rtol=1e-5), pool_type
        out_tiled = jax.block_until_ready(
            mask_pool(x3, mask3, pool_type, x_block_budget_bytes=1, max_unroll=1))
        assert jnp.allclose(out_tiled, ref, atol=1e-5, rtol=1e-5), pool_type

    print("KERNEL_OK")
</pallas_src>

<mosaic_0001>
module attributes {stable_mosaic.version = 11 : i64} {
  func.func @_mask_pool_single_kernel(%arg0: i32, %arg1: i32, %arg2: i32, %arg3: memref<2xi32, #tpu.memory_space<smem>>, %arg4: memref<1x4x256xf32, #tpu.memory_space<vmem>>, %arg5: memref<1x1x256xi8, #tpu.memory_space<vmem>>, %arg6: memref<1x4x1xf32, #tpu.memory_space<vmem>>) attributes {dimension_semantics = [#tpu.dimension_semantics<parallel>, #tpu.dimension_semantics<parallel>, #tpu.dimension_semantics<arbitrary>], iteration_bounds = array<i64: 2, 1, 1>, scalar_prefetch = 1 : i64, scratch_operands = 0 : i64, tpu.core_type = #tpu.core_type<tc>, window_params = [{transform_indices = @transform_0, window_bounds = array<i64: 1, 4, 256>}, {transform_indices = @transform_1, window_bounds = array<i64: 1, 1, 256>}, {transform_indices = @transform_2, window_bounds = array<i64: 1, 4, 1>}]} {
    %c0 = arith.constant 0 : index
    %c0_0 = arith.constant 0 : index
    %c0_1 = arith.constant 0 : index
    %0 = vector.load %arg4[%c0, %c0_0, %c0_1] : memref<1x4x256xf32, #tpu.memory_space<vmem>>, vector<1x4x256xf32>
    %1 = vector.shape_cast %0 : vector<1x4x256xf32> to vector<4x256xf32>
    %c0_2 = arith.constant 0 : index
    %c0_3 = arith.constant 0 : index
    %c0_4 = arith.constant 0 : index
    %2 = vector.load %arg5[%c0_2, %c0_3, %c0_4] : memref<1x1x256xi8, #tpu.memory_space<vmem>>, vector<1x1x256xi8>
    %3 = vector.shape_cast %2 : vector<1x1x256xi8> to vector<1x256xi8>
    %c0_i8 = arith.constant 0 : i8
    %4 = vector.broadcast %c0_i8 : i8 to vector<1x256xi8>
    %5 = arith.cmpi ne, %3, %4 : vector<1x256xi8>
    %cst = arith.constant -3.40282347E+38 : f32
    %6 = vector.shape_cast %5 : vector<1x256xi1> to vector<1x256xi1>
    %7 = vector.broadcast %6 : vector<1x256xi1> to vector<4x256xi1>
    %8 = vector.broadcast %cst : f32 to vector<4x256xf32>
    %9 = arith.select %7, %1, %8 : vector<4x256xi1>, vector<4x256xf32>
    %cst_5 = arith.constant dense<0xFF800000> : vector<4xf32>
    %10 = vector.multi_reduction <maximumf>, %9, %cst_5 [1] : vector<4x256xf32> to vector<4xf32>
    %11 = vector.shape_cast %10 : vector<4xf32> to vector<4x1xf32>
    %12 = arith.index_cast %arg0 : i32 to index
    %13 = memref.load %arg3[%12] : memref<2xi32, #tpu.memory_space<smem>>
    %c0_i32 = arith.constant 0 : i32
    %14 = arith.cmpi sgt, %13, %c0_i32 : i32
    %cst_6 = arith.constant 0.000000e+00 : f32
    %15 = vector.broadcast %cst_6 : f32 to vector<4x1xf32>
    %16 = arith.select %14, %11, %15 : vector<4x1xf32>
    %17 = vector.shape_cast %16 : vector<4x1xf32> to vector<1x4x1xf32>
    %c0_7 = arith.constant 0 : index
    %c0_8 = arith.constant 0 : index
    %c0_9 = arith.constant 0 : index
    %18 = vector.load %arg6[%c0_7, %c0_8, %c0_9] : memref<1x4x1xf32, #tpu.memory_space<vmem>>, vector<1x4x1xf32>
    tpu.vector_store %arg6[%c0_7, %c0_8, %c0_9], %17 {strides = array<i32>} : memref<1x4x1xf32, #tpu.memory_space<vmem>>, vector<1x4x1xf32>,
    return
  }
  func.func @transform_0(%arg0: i32, %arg1: i32, %arg2: i32, %arg3: memref<2xi32, #tpu.memory_space<smem>>) -> (i32, i32, i32) {
    %c0_i32 = arith.constant 0 : i32
    return %arg0, %arg1, %arg2 : i32, i32, i32
  }
  func.func @transform_1(%arg0: i32, %arg1: i32, %arg2: i32, %arg3: memref<2xi32, #tpu.memory_space<smem>>) -> (i32, i32, i32) {
    %c0_i32 = arith.constant 0 : i32
    %c0_i32_0 = arith.constant 0 : i32
    return %arg0, %c0_i32, %arg2 : i32, i32, i32
  }
  func.func @transform_2(%arg0: i32, %arg1: i32, %arg2: i32, %arg3: memref<2xi32, #tpu.memory_space<smem>>) -> (i32, i32, i32) {
    %c0_i32 = arith.constant 0 : i32
    %c0_i32_0 = arith.constant 0 : i32
    return %arg0, %arg1, %c0_i32 : i32, i32, i32
  }
}

</mosaic_0001>

<bundles_post_ra>
// kernel: tpu_custom_call.1
= control target key start
LH: loop header
LB: loop body
LE: loop exit
PB: predicated region body
PF: predicated region fallthrough
CT: control target
= control target key end

     0   :  { %s554_s15 = smov [#allocation3]   ;;  %s675_s0 = inlined_call_operand.vmem [shape: s32[2], index: 0, kind: input, shape index: {}]   ;;  %s676_s1 = inlined_call_operand.hbm [shape: f32[2,4,256], index: 1, kind: input, shape index: {}]   ;;  %s677_s2 = inlined_call_operand.vmem [shape: s8[2,1,256], index: 2, kind: input, shape index: {}]   ;;  %s678_s3 = inlined_call_operand.vmem [shape: f32[2,4,1], index: 3, kind: output, shape index: {}]  }
   0x1   :  { %s9_s14 = sshll.u32 %s675_s0, 4  ;;  %s10_s14 = int_to_ptr.vmem [resolvable:$true] %s9_s14 }
   0x2   :  { %12 = dma.vmem_to_smem %s10_s14, 16, %s554_s15, [#allocation2] }
   0x3   :  { %524 = dma.done.wait [#allocation2], 16 }
   0x4   :  { %525 = vsyncadd [#allocation2], 4294967280 }
   0x5   :  { %15 = sfence }
   0x6   :  { %16 = vsyncpa [#allocation5], 0 }
   0x7   :  { %18 = vsyncpa [#allocation5 + $0x1], 0  ;;  %s579_s16 = smov 0   ;;  %s581_s17 = smov 0  }
   0x8   :  { %s583_s18 = smov 0   ;;  %s585_s19 = smov 0  }
   0x9   :  { %s587_s20 = smov 0   ;;  %s589_s21 = smov 0  }
   0xa LB: > { %s387_s0 = sadd.s32 4294967295, %s552_s21   ;;  %s43_s22 = sadd.s32 1, %s548_s20  ;;  %s552_s21 = sphi %s589_s21, %s24_s21   ;;  %s548_s20 = sphi %s587_s20, %s685_s20   ;;  %s544_s19 = sphi %s585_s19, %s684_s19   ;;  %s540_s18 = sphi %s583_s18, %s683_s18   ;;  %s536_s17 = sphi %s581_s17, %s682_s17   ;;  %s532_s16 = sphi %s579_s16, %s681_s16  }
   0xb   : > { %p45_p0 = scmp.ge.s32.totalorder %s43_s22, 2  ;;  %s54_s23 = sadd.s32 1, %s540_s18 }
   0xc   : > { %p61_p1 = scmp.ne.s32.totalorder %s540_s18, %s536_s17  ;;  %p62_p2 = scmp.eq.s32.totalorder %s552_s21, 0 }
   0xd   : > { %s687_s22 = smov (%p45_p0, %s43_s22), 0  ;;  %p67_p4 = scmp.ne.s32.totalorder %s536_s17, %s532_s16 }
   0xe   : > { %p615_p3 = por %p62_p2, %p61_p1  ;;  %s47_s25 = ssub.s32 %s548_s20, %s687_s22 }
   0xf   : > { %p68_p5 = scmp.eq.s32.totalorder %s387_s0, 0  ;;  %p52_p6 = scmp.eq.s32.totalorder %s47_s25, 0 }
  0x10   : > { %p407_p8 = scmp.lt.s32.totalorder %s552_s21, 2  ;;  %s147_s28 = sand.u32 1, %s540_s18  }
  0x11   : > { %p622_p7 = por %p68_p5, %p67_p4  ;;  %s400_s29 = sshll.u32 %s548_s20, 3 }
  0x12   : > { %s628_s27 = scalar_select %p52_p6, %s540_s18, %s54_s23  }
  0x13   : > { %s391_s30 = sshll.u32 %s147_s28, 3  ;;  %s160_s6 = scalar_lea.hbm %s676_s1, %s400_s29 }
  0x14   : > { %s162_s7 = sshll.u32 %s160_s6, 4  ;;  %s151_s8 = scalar_lea.vmem [#allocation4], %s391_s30  ;;  %s163_s7 = int_to_ptr.hbm [resolvable:$true] %s162_s7 }
  0x15   : > { %s164_s9 = sshll.u32 %s151_s8, 4  ;;  %p404_p9 = pnand %p407_p8, %p615_p3  ;;  %s165_s9 = int_to_ptr.vmem [resolvable:$true] %s164_s9 }
  0x16   : > { %p394_p10 = scmp.ge.s32.totalorder %s552_s21, 1  ;;  %p181_p11 = scmp.lt.s32.totalorder %s552_s21, 3 }
  0x17   : > { %s148_s10 = scalar_lea.sflag [#allocation5], %s147_s28 }
  0x18   : > { %406 = dma.hbm_to_vmem [thread:$0]  (!%p404_p9), %s163_s7, 128, %s165_s9, %s148_s10  }
  0x19   : > { %p182_p12 = pnand %p394_p10, %p181_p11 }
  0x1a   : > { %s187_s11 = sand.u32 (!%p182_p12), 1, %s536_s17  }
  0x1b   : > { %185 = sbr.rel (%p182_p12) target bundleno = 175 (0xaf), region = 28  ;;  %s395_s12 = sshll.u32 (!%p182_p12), %s187_s11, 3 }
  0x1c   : > { %s188_s13 = scalar_lea.sflag (!%p182_p12), [#allocation5], %s187_s11  ;;  %s191_s14 = scalar_lea.vmem (!%p182_p12), [#allocation4], %s395_s12 }
  0x20   : > { %527 = dma.done.wait (%p622_p7), %s188_s13, 128  }
  0x21   : > { %529 = vsyncadd (%p622_p7), %s188_s13, 4294967168  ;;  %p225_p13 = scmp.lt.s32.totalorder %s544_s19, 1  ;;  %v242_v0 = vld [vmem:[%s191_s14] sm:$0xff]  ;;  %v555_v2 = vmov 0   ;;  %vm267_vm4 = vcmask 1043456   ;;  %s273_s25 = sld [smem:[#allocation3 + %s544_s19]] }
  0x22   : > { %260 = vst [vmem:[#allocation1] ss:$2 sm:$0xff] %v242_v0  ;;  %vm279_vm8 = vcmask 3072  }
  0x23   : > { %s646_s15 = scalar_select %p225_p13, %s544_s19, 1 }
  0x25   : > { %s396_s16 = sshll.u32 %s646_s15, 1  ;;  %s397_s28 = sshll.u32 %s646_s15, 2 }
  0x26   : > { %s231_s24 = scalar_lea.vmem %s677_s2, %s396_s16  ;;  %s239_s4 = scalar_lea.vmem %s678_s3, %s397_s28 }
  0x27   : > { %v243_v1 = vld [vmem:[%s231_s24] sm:$0x3]  ;;  %p274_p0 = scmp.gt.s32.totalorder %s273_s25, 0 }
  0x28   : > { %vm244_vm0 = vnez %v243_v1 }
  0x29   : > { %v245_v3 = vsel %vm244_vm0, 16843009, %v555_v2  ;;  %v261_v10 = vld.sshfl [vmem:[#allocation1] sm:$0xff pattern:$0x75316420] }
  0x2a   : > { %v246_v4 = vunpack.c.0.s8 %v245_v3  ;;  %v262_v13 = vld.sshfl [vmem:[#allocation1 + $0x8] sm:$0xff pattern:$0x75316420]  ;;  %s275_s26 = scalar_select %p274_p0, 1, 0 }
  0x2c   : > { %vm247_vm1 = vcmp.ne.s32.totalorder %v246_v4, 0  ;;  %v276_v19 = vstv %s275_s26 }
  0x2d   : > { %v248_v5 = vsel %vm247_vm1, 1, %v555_v2  ;;  %vm277_vm7 = vcmp.eq.s32.totalorder %v276_v19, 1 }
  0x2e   : > { %v249_v6 = vperm.slane %v248_v5, 0  ;;  %v250_v7 = vperm.slane %v248_v5, 4 }
  0x30   : > { %vm251_vm2 = vcmp.ne.s32.totalorder %v249_v6, 0  ;;  %vm252_vm3 = vcmp.ne.s32.totalorder %v250_v7, 0 }
  0x31   : > { %v253_v8 = vsel %vm251_vm2, 1, %v555_v2  ;;  %v254_v9 = vsel %vm252_vm3, 1, %v555_v2 }
  0x32   : > { %v255_v11 = vperm.slane %v253_v8, 0  ;;  %v256_v12 = vperm.slane %v254_v9, 0 }
  0x34   : > { %vm257_vm5 = vcmp.eq.s32.totalorder %v255_v11, 1  ;;  %vm258_vm6 = vcmp.eq.s32.totalorder %v256_v12, 1 }
  0x35   : > { %v265_v14 = vsel %vm257_vm5, %v261_v10, -3.4028235e+38  ;;  %v266_v15 = vsel %vm258_vm6, %v262_v13, -3.4028235e+38 }
  0x36   : > { %v268_v16 = vsel %vm267_vm4, %v265_v14, -inf  ;;  %v269_v17 = vsel %vm267_vm4, %v266_v15, -inf }
  0x37   : > { %v270_v18 = vmax.f32 %v268_v16, %v269_v17 }
  0x39   : > { %271 = vmax.xlane.f32.xlu0 %v270_v18 }
  0xac   : > { %v272_v20 = vpop.xlane.xlu0 %271 }
  0xad   : > { %v278_v21 = vsel %vm277_vm7, %v272_v20, 0.0 }
  0xae   : > { %280 = vst.msk [vmem:[%s239_s4] sm:$0xf] %vm279_vm8, %v278_v21 }
  0xaf PF: > { %s24_s21 = sadd.s32 1, %s552_s21   ;;  %s681_s16 = smov %s536_s17 }
  0xb0   : > { %p21_p1 = scmp.ge.s32.totalorder %s24_s21, 4   ;;  %s682_s17 = smov %s540_s18 }
  0xb1   : > { %s683_s18 = smov %s628_s27  ;;  %s684_s19 = smov %s548_s20 }
  0xb2   : > { %s685_s20 = smov %s687_s22  ;;  %23 = sbr.rel (!%p21_p1) target bundleno = 10 (0xa), region = 71 }
  0xb7   :  { %306 = vsyncpa [#allocation5], 1 }
  0xb8   :  { %308 = vsyncpa [#allocation5 + $0x1], 1 }

</bundles_post_ra>
